<compile_context>
chip_gen: v6e
topology: v6e:2x2x1
jax: 0.10.0
libtpu: 0.0.40
codegen_flags: <defaults>
</compile_context>

<pallas_src>
import functools

import jax
import jax.numpy as jnp
from jax import lax
from jax.experimental import pallas as pl
from jax.experimental.pallas import tpu as pltpu


def _round_up(a, b):
    return (a + b - 1) // b * b


def _pick_tile(total, base, cap):
    """Largest multiple of `base` that divides `total` and is <= cap."""
    cap = max(cap, base)
    best = base
    t = base
    while t <= min(total, cap):
        if total % t == 0:
            best = t
        t += base
    return best


def _ffn_kernel(x_ref, g_ref, bln_ref, w1_ref, b1_ref, w2_ref, b2_ref,
                o_ref, xn_ref, acc_ref, *, d_actual, approximate_gelu):
    """Grid: (row_tiles, hidden_tiles).  Hidden axis is the reduction axis."""
    j = pl.program_id(1)

    @pl.when(j == 0)
    def _():
        # --- LayerNorm over the (unpadded) model dim, stats in f32 ---
        x = x_ref[...].astype(jnp.float32)
        inv_d = jnp.float32(1.0 / d_actual)
        mean = jnp.sum(x, axis=-1, keepdims=True) * inv_d
        lane = lax.broadcasted_iota(jnp.int32, x.shape, 1)
        valid = (lane < d_actual).astype(jnp.float32)
        cent = (x - mean) * valid
        var = jnp.sum(cent * cent, axis=-1, keepdims=True) * inv_d
        xn = cent * lax.rsqrt(var + jnp.float32(1e-5)) * g_ref[...] + bln_ref[...]
        xn_ref[...] = xn.astype(xn_ref.dtype)          # MXU feed dtype (e.g. bf16)
        acc_ref[...] = jnp.zeros_like(acc_ref)

    # --- Linear(dim -> th chunk of hidden), f32 accumulate on the MXU ---
    h = jnp.dot(xn_ref[...], w1_ref[...], preferred_element_type=jnp.float32)
    h = h + b1_ref[...]

    # --- GELU (exact erf matches nn.GELU(); tanh form optional) ---
    if approximate_gelu:
        h = jax.nn.gelu(h, approximate=True)
    else:
        h = 0.5 * h * (1.0 + lax.erf(h * jnp.float32(0.7071067811865476)))

    # --- Linear(th chunk -> dim), accumulated over hidden tiles ---
    acc_ref[...] += jnp.dot(h.astype(w2_ref.dtype), w2_ref[...],
                            preferred_element_type=jnp.float32)

    @pl.when(j == pl.num_programs(1) - 1)
    def _():
        o_ref[...] = (acc_ref[...] + b2_ref[...]).astype(o_ref.dtype)


def feed_forward(x, ln_gamma, ln_beta, w1, b1, w2, b2, *,
                 tm_max=512, th_max=512,
                 compute_dtype=None, approximate_gelu=False):
    """x: (B, S, dim).  Weights are stored transposed (the kernel does x @ W),
    matching nn.Linear weight.T.  Dropout (eval mode) is identity and omitted."""
    B, S, D = x.shape
    assert w1.shape[0] == D
    H = w1.shape[1]
    assert w2.shape == (H, D)
    N = B * S

    if compute_dtype is None:
        compute_dtype = x.dtype          # bf16 input -> bf16 MXU feed
    compute_dtype = jnp.dtype(compute_dtype)

    # --- lane-align D and H to 128; pad rows to the row tile ---
    Dp = _round_up(D, 128)
    Hp = _round_up(H, 128)
    th = _pick_tile(Hp, 128, th_max)
    tm = min(tm_max, _round_up(N, 16))   # multiple of 16 (bf16 sublane packing)
    Np = _round_up(N, tm)

    x2 = jnp.pad(x.reshape(N, D), ((0, Np - N), (0, Dp - D)))
    g2 = jnp.pad(ln_gamma.astype(jnp.float32), (0, Dp - D)).reshape(1, Dp)
    bln2 = jnp.pad(ln_beta.astype(jnp.float32), (0, Dp - D)).reshape(1, Dp)
    w1p = jnp.pad(w1.astype(compute_dtype), ((0, Dp - D), (0, Hp - H)))
    b1p = jnp.pad(b1.astype(jnp.float32), (0, Hp - H)).reshape(1, Hp)
    w2p = jnp.pad(w2.astype(compute_dtype), ((0, Hp - H), (0, Dp - D)))
    b2p = jnp.pad(b2.astype(jnp.float32), (0, Dp - D)).reshape(1, Dp)

    grid = (Np // tm, Hp // th)

    # --- VMEM budget hint (double-buffered tiles + scratch), clamped ---
    csz = compute_dtype.itemsize
    xsz = jnp.dtype(x.dtype).itemsize
    vmem_est = (2 * tm * Dp * xsz            # x tile (double-buffered)
                + 2 * tm * Dp * xsz          # out tile
                + tm * Dp * csz              # xn scratch
                + tm * Dp * 4                # f32 accumulator
                + 2 * Dp * th * csz          # W1 tile
                + 2 * th * Dp * csz          # W2 tile
                + 2 * (2 * Dp + Hp + Dp) * 4)
    vmem_limit = int(min(max(vmem_est + (8 << 20), 32 << 20), 112 << 20))

    cost = pl.CostEstimate(
        flops=int(4 * Np * Dp * Hp),
        transcendentals=int(Np * Hp),
        bytes_accessed=int(x2.size * xsz + Np * Dp * xsz
                           + grid[0] * (w1p.size + w2p.size) * csz),
    )

    kernel = functools.partial(_ffn_kernel, d_actual=D,
                               approximate_gelu=approximate_gelu)

    out = pl.pallas_call(
        kernel,
        out_shape=jax.ShapeDtypeStruct((Np, Dp), x.dtype),
        grid_spec=pltpu.PrefetchScalarGridSpec(
            num_scalar_prefetch=0,
            grid=grid,
            in_specs=[
                pl.BlockSpec((tm, Dp), lambda i, j: (i, 0)),   # x row tile
                pl.BlockSpec((1, Dp), lambda i, j: (0, 0)),    # ln gamma
                pl.BlockSpec((1, Dp), lambda i, j: (0, 0)),    # ln beta
                pl.BlockSpec((Dp, th), lambda i, j: (0, j)),   # W1 hidden tile
                pl.BlockSpec((1, th), lambda i, j: (0, j)),    # b1 hidden tile
                pl.BlockSpec((th, Dp), lambda i, j: (j, 0)),   # W2 hidden tile
                pl.BlockSpec((1, Dp), lambda i, j: (0, 0)),    # b2
            ],
            out_specs=pl.BlockSpec((tm, Dp), lambda i, j: (i, 0)),
            scratch_shapes=[
                pltpu.VMEM((tm, Dp), compute_dtype),   # LayerNormed activations
                pltpu.VMEM((tm, Dp), jnp.float32),     # output accumulator
            ],
        ),
        compiler_params=pltpu.CompilerParams(
            dimension_semantics=("parallel", "arbitrary"),
            vmem_limit_bytes=vmem_limit,
        ),
        cost_estimate=cost,
    )(x2, g2, bln2, w1p, b1p, w2p, b2p)

    return out[:N, :D].reshape(B, S, D)


def _reference(x, ln_gamma, ln_beta, w1, b1, w2, b2):
    xf = x.astype(jnp.float32)
    mean = jnp.mean(xf, axis=-1, keepdims=True)
    var = jnp.mean((xf - mean) ** 2, axis=-1, keepdims=True)
    xn = (xf - mean) / jnp.sqrt(var + 1e-5) * ln_gamma + ln_beta
    h = xn @ w1 + b1
    h = 0.5 * h * (1.0 + lax.erf(h / jnp.sqrt(2.0)))
    return (h @ w2 + b2).astype(jnp.float32)


if __name__ == "__main__":
    key = jax.random.PRNGKey(0)
    B, S, D, H = 2, 8, 32, 64  # batch, seq, dim, hidden_dim

    k_x, k_g, k_b, k_w1, k_b1, k_w2, k_b2 = jax.random.split(key, 7)
    x = jax.random.normal(k_x, (B, S, D), dtype=jnp.float32)

    # Deterministic synthetic parameters (shapes match the nn.Module __init__)
    gamma = jnp.ones((D,), jnp.float32) + 0.01 * jax.random.normal(k_g, (D,))
    beta = 0.01 * jax.random.normal(k_b, (D,))
    w1 = jax.random.normal(k_w1, (D, H), dtype=jnp.float32) * (1.0 / jnp.sqrt(D))
    b1 = 0.01 * jax.random.normal(k_b1, (H,))
    w2 = jax.random.normal(k_w2, (H, D), dtype=jnp.float32) * (1.0 / jnp.sqrt(H))
    b2 = 0.01 * jax.random.normal(k_b2, (D,))

    y_ref = _reference(x, gamma, beta, w1, b1, w2, b2)

    # f32 path (exact-erf GELU, matches PyTorch semantics bit-for-op)
    y = feed_forward(x, gamma, beta, w1, b1, w2, b2)
    jax.block_until_ready(y)
    assert y.shape == (B, S, D)
    assert jnp.allclose(y, y_ref, atol=1e-4, rtol=1e-4)

    # bf16 MXU-feed path (f32 LN stats + f32 accumulate), looser tolerance
    y_bf16 = feed_forward(x.astype(jnp.bfloat16), gamma, beta, w1, b1, w2, b2)
    jax.block_until_ready(y_bf16)
    assert jnp.allclose(y_bf16.astype(jnp.float32), y_ref, atol=0.1, rtol=0.05)

    # TODO(synk): Dropout (p>0, training mode) not implemented; eval mode only.
    print("KERNEL_OK")
</pallas_src>

<mosaic_0001>
module attributes {stable_mosaic.version = 11 : i64} {
  func.func @_ffn_kernel(%arg0: i32, %arg1: i32, %arg2: memref<16x128xf32, #tpu.memory_space<vmem>>, %arg3: memref<1x128xf32, #tpu.memory_space<vmem>>, %arg4: memref<1x128xf32, #tpu.memory_space<vmem>>, %arg5: memref<128x128xf32, #tpu.memory_space<vmem>>, %arg6: memref<1x128xf32, #tpu.memory_space<vmem>>, %arg7: memref<128x128xf32, #tpu.memory_space<vmem>>, %arg8: memref<1x128xf32, #tpu.memory_space<vmem>>, %arg9: memref<16x128xf32, #tpu.memory_space<vmem>>, %arg10: memref<16x128xf32, #tpu.memory_space<vmem>>, %arg11: memref<16x128xf32, #tpu.memory_space<vmem>>) attributes {dimension_semantics = [#tpu.dimension_semantics<parallel>, #tpu.dimension_semantics<arbitrary>], iteration_bounds = array<i64: 1, 1>, scalar_prefetch = 0 : i64, scratch_operands = 2 : i64, tpu.core_type = #tpu.core_type<tc>, window_params = [{transform_indices = @transform_0, window_bounds = array<i64: 16, 128>}, {pipeline_mode = #tpu.pipeline_mode<synchronous>, transform_indices = @transform_1, window_bounds = array<i64: 1, 128>}, {pipeline_mode = #tpu.pipeline_mode<synchronous>, transform_indices = @transform_2, window_bounds = array<i64: 1, 128>}, {transform_indices = @transform_3, window_bounds = array<i64: 128, 128>}, {transform_indices = @transform_4, window_bounds = array<i64: 1, 128>}, {transform_indices = @transform_5, window_bounds = array<i64: 128, 128>}, {pipeline_mode = #tpu.pipeline_mode<synchronous>, transform_indices = @transform_6, window_bounds = array<i64: 1, 128>}, {transform_indices = @transform_7, window_bounds = array<i64: 16, 128>}]} {
    %c0_i32 = arith.constant 0 : i32
    %0 = arith.cmpi eq, %arg1, %c0_i32 : i32
    %1 = arith.extui %0 : i1 to i32
    %c0_i32_0 = arith.constant 0 : i32
    %2 = arith.cmpi ne, %1, %c0_i32_0 : i32
    scf.if %2 {
      %c0_18 = arith.constant 0 : index
      %c0_19 = arith.constant 0 : index
      %25 = vector.load %arg2[%c0_18, %c0_19] : memref<16x128xf32, #tpu.memory_space<vmem>>, vector<16x128xf32>
      %cst_20 = arith.constant dense<0.000000e+00> : vector<16xf32>
      %26 = vector.multi_reduction <add>, %25, %cst_20 [1] : vector<16x128xf32> to vector<16xf32>
      %27 = vector.shape_cast %26 : vector<16xf32> to vector<16x1xf32>
      %cst_21 = arith.constant 3.125000e-02 : f32
      %28 = vector.broadcast %cst_21 : f32 to vector<16x1xf32>
      %29 = arith.mulf %27, %28 : vector<16x1xf32>
      %30 = tpu.iota {dimensions = array<i32: 1>} : vector<16x128xi32>
      %c32_i32 = arith.constant 32 : i32
      %31 = vector.broadcast %c32_i32 : i32 to vector<16x128xi32>
      %32 = arith.cmpi slt, %30, %31 : vector<16x128xi32>
      %33 = arith.extui %32 : vector<16x128xi1> to vector<16x128xi32>
      %34 = arith.sitofp %33 : vector<16x128xi32> to vector<16x128xf32>
      %35 = vector.broadcast %29 : vector<16x1xf32> to vector<16x128xf32>
      %36 = arith.subf %25, %35 : vector<16x128xf32>
      %37 = arith.mulf %36, %34 : vector<16x128xf32>
      %38 = arith.mulf %37, %37 : vector<16x128xf32>
      %cst_22 = arith.constant dense<0.000000e+00> : vector<16xf32>
      %39 = vector.multi_reduction <add>, %38, %cst_22 [1] : vector<16x128xf32> to vector<16xf32>
      %40 = vector.shape_cast %39 : vector<16xf32> to vector<16x1xf32>
      %cst_23 = arith.constant 3.125000e-02 : f32
      %41 = vector.broadcast %cst_23 : f32 to vector<16x1xf32>
      %42 = arith.mulf %40, %41 : vector<16x1xf32>
      %cst_24 = arith.constant 9.99999974E-6 : f32
      %43 = vector.broadcast %cst_24 : f32 to vector<16x1xf32>
      %44 = arith.addf %42, %43 : vector<16x1xf32>
      %45 = math.rsqrt %44 : vector<16x1xf32>
      %46 = vector.broadcast %45 : vector<16x1xf32> to vector<16x128xf32>
      %47 = arith.mulf %37, %46 : vector<16x128xf32>
      %c0_25 = arith.constant 0 : index
      %c0_26 = arith.constant 0 : index
      %48 = vector.load %arg3[%c0_25, %c0_26] : memref<1x128xf32, #tpu.memory_space<vmem>>, vector<1x128xf32>
      %49 = vector.broadcast %48 : vector<1x128xf32> to vector<16x128xf32>
      %50 = arith.mulf %47, %49 : vector<16x128xf32>
      %c0_27 = arith.constant 0 : index
      %c0_28 = arith.constant 0 : index
      %51 = vector.load %arg4[%c0_27, %c0_28] : memref<1x128xf32, #tpu.memory_space<vmem>>, vector<1x128xf32>
      %52 = vector.broadcast %51 : vector<1x128xf32> to vector<16x128xf32>
      %53 = arith.addf %50, %52 : vector<16x128xf32>
      %c0_29 = arith.constant 0 : index
      %c0_30 = arith.constant 0 : index
      %54 = vector.load %arg10[%c0_29, %c0_30] : memref<16x128xf32, #tpu.memory_space<vmem>>, vector<16x128xf32>
      tpu.vector_store %arg10[%c0_29, %c0_30], %53 {strides = array<i32>} : memref<16x128xf32, #tpu.memory_space<vmem>>, vector<16x128xf32>,
      %cst_31 = arith.constant 0.000000e+00 : f32
      %55 = vector.broadcast %cst_31 : f32 to vector<16x128xf32>
      %c0_32 = arith.constant 0 : index
      %c0_33 = arith.constant 0 : index
      %56 = vector.load %arg11[%c0_32, %c0_33] : memref<16x128xf32, #tpu.memory_space<vmem>>, vector<16x128xf32>
      tpu.vector_store %arg11[%c0_32, %c0_33], %55 {strides = array<i32>} : memref<16x128xf32, #tpu.memory_space<vmem>>, vector<16x128xf32>,
    } else {
    }
    %c0 = arith.constant 0 : index
    %c0_1 = arith.constant 0 : index
    %3 = vector.load %arg10[%c0, %c0_1] : memref<16x128xf32, #tpu.memory_space<vmem>>, vector<16x128xf32>
    %c0_2 = arith.constant 0 : index
    %c0_3 = arith.constant 0 : index
    %4 = vector.load %arg5[%c0_2, %c0_3] : memref<128x128xf32, #tpu.memory_space<vmem>>, vector<128x128xf32>
    %cst = arith.constant dense<0.000000e+00> : vector<16x128xf32>
    %5 = tpu.matmul %3, %4, %cst {dimension_numbers = #tpu.dot_dimension_numbers<[1], [0], [0], [1], [0, 0, 1, 1], [], []>} : vector<16x128xf32>, vector<128x128xf32>, vector<16x128xf32> -> vector<16x128xf32>
    %c0_4 = arith.constant 0 : index
    %c0_5 = arith.constant 0 : index
    %6 = vector.load %arg6[%c0_4, %c0_5] : memref<1x128xf32, #tpu.memory_space<vmem>>, vector<1x128xf32>
    %7 = vector.broadcast %6 : vector<1x128xf32> to vector<16x128xf32>
    %8 = arith.addf %5, %7 : vector<16x128xf32>
    %cst_6 = arith.constant 5.000000e-01 : f32
    %9 = vector.broadcast %cst_6 : f32 to vector<16x128xf32>
    %10 = arith.mulf %9, %8 : vector<16x128xf32>
    %cst_7 = arith.constant 0.707106769 : f32
    %11 = vector.broadcast %cst_7 : f32 to vector<16x128xf32>
    %12 = arith.mulf %8, %11 : vector<16x128xf32>
    %13 = math.erf %12 : vector<16x128xf32>
    %cst_8 = arith.constant 1.000000e+00 : f32
    %14 = vector.broadcast %cst_8 : f32 to vector<16x128xf32>
    %15 = arith.addf %14, %13 : vector<16x128xf32>
    %16 = arith.mulf %10, %15 : vector<16x128xf32>
    %c0_9 = arith.constant 0 : index
    %c0_10 = arith.constant 0 : index
    %17 = vector.load %arg11[%c0_9, %c0_10] : memref<16x128xf32, #tpu.memory_space<vmem>>, vector<16x128xf32>
    %c0_11 = arith.constant 0 : index
    %c0_12 = arith.constant 0 : index
    %18 = vector.load %arg7[%c0_11, %c0_12] : memref<128x128xf32, #tpu.memory_space<vmem>>, vector<128x128xf32>
    %cst_13 = arith.constant dense<0.000000e+00> : vector<16x128xf32>
    %19 = tpu.matmul %16, %18, %cst_13 {dimension_numbers = #tpu.dot_dimension_numbers<[1], [0], [0], [1], [0, 0, 1, 1], [], []>} : vector<16x128xf32>, vector<128x128xf32>, vector<16x128xf32> -> vector<16x128xf32>
    %20 = arith.addf %17, %19 : vector<16x128xf32>
    %c0_14 = arith.constant 0 : index
    %c0_15 = arith.constant 0 : index
    %21 = vector.load %arg11[%c0_14, %c0_15] : memref<16x128xf32, #tpu.memory_space<vmem>>, vector<16x128xf32>
    tpu.vector_store %arg11[%c0_14, %c0_15], %20 {strides = array<i32>} : memref<16x128xf32, #tpu.memory_space<vmem>>, vector<16x128xf32>,
    %c0_i32_16 = arith.constant 0 : i32
    %22 = arith.cmpi eq, %arg1, %c0_i32_16 : i32
    %23 = arith.extui %22 : i1 to i32
    %c0_i32_17 = arith.constant 0 : i32
    %24 = arith.cmpi ne, %23, %c0_i32_17 : i32
    scf.if %24 {
      %c0_18 = arith.constant 0 : index
      %c0_19 = arith.constant 0 : index
      %25 = vector.load %arg11[%c0_18, %c0_19] : memref<16x128xf32, #tpu.memory_space<vmem>>, vector<16x128xf32>
      %c0_20 = arith.constant 0 : index
      %c0_21 = arith.constant 0 : index
      %26 = vector.load %arg8[%c0_20, %c0_21] : memref<1x128xf32, #tpu.memory_space<vmem>>, vector<1x128xf32>
      %27 = vector.broadcast %26 : vector<1x128xf32> to vector<16x128xf32>
      %28 = arith.addf %25, %27 : vector<16x128xf32>
      %c0_22 = arith.constant 0 : index
      %c0_23 = arith.constant 0 : index
      %29 = vector.load %arg9[%c0_22, %c0_23] : memref<16x128xf32, #tpu.memory_space<vmem>>, vector<16x128xf32>
      tpu.vector_store %arg9[%c0_22, %c0_23], %28 {strides = array<i32>} : memref<16x128xf32, #tpu.memory_space<vmem>>, vector<16x128xf32>,
    } else {
    }
    return
  }
  func.func @transform_0(%arg0: i32, %arg1: i32) -> (i32, i32) {
    %c0_i32 = arith.constant 0 : i32
    %c0_i32_0 = arith.constant 0 : i32
    return %arg0, %c0_i32 : i32, i32
  }
  func.func @transform_1(%arg0: i32, %arg1: i32) -> (i32, i32) {
    %c0_i32 = arith.constant 0 : i32
    %c0_i32_0 = arith.constant 0 : i32
    %c0_i32_1 = arith.constant 0 : i32
    return %c0_i32, %c0_i32_0 : i32, i32
  }
  func.func @transform_2(%arg0: i32, %arg1: i32) -> (i32, i32) {
    %c0_i32 = arith.constant 0 : i32
    %c0_i32_0 = arith.constant 0 : i32
    %c0_i32_1 = arith.constant 0 : i32
    return %c0_i32, %c0_i32_0 : i32, i32
  }
  func.func @transform_3(%arg0: i32, %arg1: i32) -> (i32, i32) {
    %c0_i32 = arith.constant 0 : i32
    %c0_i32_0 = arith.constant 0 : i32
    return %c0_i32, %arg1 : i32, i32
  }
  func.func @transform_4(%arg0: i32, %arg1: i32) -> (i32, i32) {
    %c0_i32 = arith.constant 0 : i32
    %c0_i32_0 = arith.constant 0 : i32
    return %c0_i32, %arg1 : i32, i32
  }
  func.func @transform_5(%arg0: i32, %arg1: i32) -> (i32, i32) {
    %c0_i32 = arith.constant 0 : i32
    %c0_i32_0 = arith.constant 0 : i32
    return %arg1, %c0_i32 : i32, i32
  }
  func.func @transform_6(%arg0: i32, %arg1: i32) -> (i32, i32) {
    %c0_i32 = arith.constant 0 : i32
    %c0_i32_0 = arith.constant 0 : i32
    %c0_i32_1 = arith.constant 0 : i32
    return %c0_i32, %c0_i32_0 : i32, i32
  }
  func.func @transform_7(%arg0: i32, %arg1: i32) -> (i32, i32) {
    %c0_i32 = arith.constant 0 : i32
    %c0_i32_0 = arith.constant 0 : i32
    return %arg0, %c0_i32 : i32, i32
  }
}

</mosaic_0001>

<bundles_post_ra>
// kernel: tpu_custom_call.1
= control target key start
LH: loop header
LB: loop body
LE: loop exit
PB: predicated region body
PF: predicated region fallthrough
CT: control target
= control target key end

     0   :  { %12 = vsyncpa [#allocation5], 0  ;;  %s671_s0 = inlined_call_operand.hbm [shape: f32[16,128], index: 0, kind: input, shape index: {}]   ;;  %s672_s1 = inlined_call_operand.vmem [shape: f32[1,128], index: 1, kind: input, shape index: {}]   ;;  %s673_s2 = inlined_call_operand.vmem [shape: f32[1,128], index: 2, kind: input, shape index: {}]   ;;  %s674_s3 = inlined_call_operand.hbm [shape: f32[128,128], index: 3, kind: input, shape index: {}]   ;;  %s675_s4 = inlined_call_operand.vmem [shape: f32[1,128], index: 4, kind: input, shape index: {}]   ;;  %s676_s5 = inlined_call_operand.hbm [shape: f32[128,128], index: 5, kind: input, shape index: {}]   ;;  %s677_s6 = inlined_call_operand.vmem [shape: f32[1,128], index: 6, kind: input, shape index: {}]   ;;  %s678_s7 = inlined_call_operand.hbm [shape: f32[16,128], index: 7, kind: output, shape index: {}]  }
   0x1   :  { %13 = vsyncpa [#allocation8], 0 }
   0x2   :  { %14 = vsyncpa [#allocation6], 0  ;;  %s578_s24 = smov [#allocation7]   ;;  %s579_s26 = smov [#allocation4]  }
   0x3   :  { %s36_s25 = sshll.u32 %s578_s24, 4  ;;  %s20_s27 = sshll.u32 %s579_s26, 4  ;;  %s37_s25 = int_to_ptr.vmem [resolvable:$true] %s36_s25  ;;  %s21_s27 = int_to_ptr.vmem [resolvable:$true] %s20_s27 }
   0x4   :  { %s500_s28 = scalar_lea.vmem %s37_s25, 2048  ;;  %p505_p1 = scmp.lt.s32.totalorder %s37_s25, %s37_s25 }
   0x5   :  { %p501_p0 = scmp.ne.s32.totalorder %s37_s25, %s500_s28  ;;  %p506_p2 = scmp.lt.s32.totalorder %s500_s28, %s500_s28 }
   0x7   :  { %p507_p3 = por %p506_p2, %p505_p1 }
   0x9   :  { %p508_p4 = pnand %p507_p3, %p501_p0 }
   0xb   :  { %511 = shalt.err (!%p508_p4)
}
   0xc   :  { %s580_s29 = smov 128   ;;  %s581_s30 = smov 8  }
   0xd   :  { %42 = dma.hbm_to_vmem [thread:$0]  %s674_s3, 2048, %s37_s25, [#allocation8], %s580_s29, %s580_s29, %s581_s30  }
   0xe   :  { %s520_s10 = scalar_lea.vmem %s21_s27, 256  ;;  %p525_p6 = scmp.lt.s32.totalorder %s21_s27, %s21_s27 }
   0xf   :  { %p521_p5 = scmp.ne.s32.totalorder %s21_s27, %s520_s10  ;;  %p526_p7 = scmp.lt.s32.totalorder %s520_s10, %s520_s10 }
  0x11   :  { %p527_p8 = por %p526_p7, %p525_p6 }
  0x13   :  { %p528_p9 = pnand %p527_p8, %p521_p5 }
  0x15   :  { %531 = shalt.err (!%p528_p9)
}
  0x16   :  { %26 = dma.hbm_to_vmem [thread:$0]  %s671_s0, 256, %s21_s27, [#allocation5], %s580_s29, %s580_s29, %s581_s30  }
  0x17   :  { %s582_s13 = smov [#allocation9]  }
  0x18   :  { %s50_s14 = sshll.u32 %s582_s13, 4  ;;  %s51_s14 = int_to_ptr.vmem [resolvable:$true] %s50_s14 }
  0x19   :  { %s540_s15 = scalar_lea.vmem %s51_s14, 2048  ;;  %p545_p11 = scmp.lt.s32.totalorder %s51_s14, %s51_s14 }
  0x1a   :  { %p541_p10 = scmp.ne.s32.totalorder %s51_s14, %s540_s15  ;;  %p546_p12 = scmp.lt.s32.totalorder %s540_s15, %s540_s15 }
  0x1c   :  { %p547_p13 = por %p546_p12, %p545_p11 }
  0x1e   :  { %p548_p0 = pnand %p547_p13, %p541_p10 }
  0x20   :  { %551 = shalt.err (!%p548_p0)
}
  0x21   :  { %56 = dma.hbm_to_vmem [thread:$0]  %s676_s5, 2048, %s51_s14, [#allocation8], %s580_s29, %s580_s29, %s581_s30  }
  0x22   :  { %572 = dma.done.wait [#allocation5], 256  }
  0x23   :  { %573 = vsyncadd [#allocation5], 4294967040 }
  0x24   :  { %574 = dma.done.wait [#allocation8], 4096  }
  0x25   :  { %575 = vsyncadd [#allocation8], 4294963200  ;;  %v72_v0 = vld [vmem:[#allocation4] sm:$0xff]  ;;  %v73_v1 = vld [vmem:[#allocation4 + $0x8] sm:$0xff]  ;;  %v80_v4 = vlaneseq  ;;  %v583_v8 = vmov 0.0   ;;  %s584_s20 = smov [#allocation10]  }
  0x26   :  { %74 = vadd.xlane.f32.xlu0 %v72_v0  ;;  %v142_v2 = vld [vmem:[#allocation7 + $0x78] sm:$0xff]  ;;  %v141_v3 = vld [vmem:[#allocation7 + $0x70] sm:$0xff]  ;;  %v140_v18 = vld [vmem:[#allocation7 + $0x68] sm:$0xff]  ;;  %s353_s21 = sshll.u32 %s584_s20, 4  ;;  %s354_s21 = int_to_ptr.vmem [resolvable:$true] %s353_s21 }
  0x27   :  { %407 = vmatprep.subr.mxu0 %v142_v2  ;;  %v81_v5 = vand.u32 127, %v80_v4  ;;  %v139_v19 = vld [vmem:[#allocation7 + $0x60] sm:$0xff]  ;;  %v138_v20 = vld [vmem:[#allocation7 + $0x58] sm:$0xff]  ;;  %v137_v21 = vld [vmem:[#allocation7 + $0x50] sm:$0xff]  ;;  %s552_s22 = scalar_lea.vmem %s354_s21, 256  ;;  %p557_p2 = scmp.lt.s32.totalorder %s354_s21, %s354_s21 }
  0x28   :  { %408 = vmatpush3.msra.mxu0 %v142_v2  ;;  %v136_v22 = vld [vmem:[#allocation7 + $0x48] sm:$0xff]  ;;  %v135_v23 = vld [vmem:[#allocation7 + $0x40] sm:$0xff]  ;;  %v134_v24 = vld [vmem:[#allocation7 + $0x38] sm:$0xff]  ;;  %p553_p1 = scmp.ne.s32.totalorder %s354_s21, %s552_s22  ;;  %p558_p3 = scmp.lt.s32.totalorder %s552_s22, %s552_s22 }
  0x29   :  { %409 = vmatprep.subr.mxu0 %v141_v3  ;;  %vm82_vm0 = vcmp.lt.s32.totalorder %v81_v5, 32  ;;  %v133_v25 = vld [vmem:[#allocation7 + $0x30] sm:$0xff]  ;;  %v132_v26 = vld [vmem:[#allocation7 + $0x28] sm:$0xff]  ;;  %v131_v27 = vld [vmem:[#allocation7 + $0x20] sm:$0xff] }
  0x2a   :  { %76 = vadd.xlane.f32.xlu0 %v73_v1  ;;  %410 = vmatpush3.msra.mxu0 %v141_v3  ;;  %v366_v9 = vsel %vm82_vm0, 1.0, %v583_v8  ;;  %v130_v28 = vld [vmem:[#allocation7 + $0x18] sm:$0xff]  ;;  %v129_v29 = vld [vmem:[#allocation7 + $0x10] sm:$0xff]  ;;  %v128_v30 = vld [vmem:[#allocation7 + $0x8] sm:$0xff]  ;;  %p559_p4 = por %p558_p3, %p557_p2 }
  0x2b   :  { %411 = vmatprep.subr.mxu0 %v140_v18  ;;  %v127_v31 = vld [vmem:[#allocation7] sm:$0xff]  ;;  %v252_v32 = vld [vmem:[#allocation9 + $0x78] sm:$0xff]  ;;  %v251_v33 = vld [vmem:[#allocation9 + $0x70] sm:$0xff] }
  0x2c   :  { %412 = vmatpush3.msra.mxu0 %v140_v18  ;;  %442 = vmatprep.subr.mxu1 %v252_v32  ;;  %v250_v34 = vld [vmem:[#allocation9 + $0x68] sm:$0xff]  ;;  %v367_v42 = vld [vmem:[%s672_s1] ss:$0 sm:$0xff]  ;;  %v249_v51 = vld [vmem:[#allocation9 + $0x60] sm:$0xff]  ;;  %p560_p5 = pnand %p559_p4, %p553_p1 }
  0x2d   :  { %413 = vmatprep.subr.mxu0 %v139_v19  ;;  %443 = vmatpush3.msra.mxu1 %v252_v32  ;;  %v368_v44 = vld [vmem:[%s673_s2] ss:$0 sm:$0xff]  ;;  %v248_v52 = vld [vmem:[#allocation9 + $0x58] sm:$0xff]  ;;  %v246_v54 = vld [vmem:[#allocation9 + $0x48] sm:$0xff] }
  0x2e   :  { %414 = vmatpush3.msra.mxu0 %v139_v19  ;;  %444 = vmatprep.subr.mxu1 %v251_v33  ;;  %v247_v53 = vld [vmem:[#allocation9 + $0x50] sm:$0xff]  ;;  %v245_v55 = vld [vmem:[#allocation9 + $0x40] sm:$0xff]  ;;  %v244_v56 = vld [vmem:[#allocation9 + $0x38] sm:$0xff] }
  0x2f   :  { %415 = vmatprep.subr.mxu0 %v138_v20  ;;  %445 = vmatpush3.msra.mxu1 %v251_v33  ;;  %v243_v57 = vld [vmem:[#allocation9 + $0x30] sm:$0xff]  ;;  %v242_v58 = vld [vmem:[#allocation9 + $0x28] sm:$0xff]  ;;  %v241_v59 = vld [vmem:[#allocation9 + $0x20] sm:$0xff] }
  0x30   :  { %416 = vmatpush3.msra.mxu0 %v138_v20  ;;  %446 = vmatprep.subr.mxu1 %v250_v34  ;;  %v240_v60 = vld [vmem:[#allocation9 + $0x18] sm:$0xff]  ;;  %v239_v61 = vld [vmem:[#allocation9 + $0x10] sm:$0xff]  ;;  %v238_v62 = vld [vmem:[#allocation9 + $0x8] sm:$0xff] }
  0x31   :  { %417 = vmatprep.subr.mxu0 %v137_v21  ;;  %447 = vmatpush3.msra.mxu1 %v250_v34  ;;  %v237_v63 = vld [vmem:[#allocation9] sm:$0xff] }
  0x32   :  { %418 = vmatpush3.msra.mxu0 %v137_v21  ;;  %448 = vmatprep.subr.mxu1 %v249_v51 }
  0x33   :  { %419 = vmatprep.subr.mxu0 %v136_v22  ;;  %449 = vmatpush3.msra.mxu1 %v249_v51 }
  0x34   :  { %420 = vmatpush3.msra.mxu0 %v136_v22  ;;  %450 = vmatprep.subr.mxu1 %v248_v52 }
  0x35   :  { %421 = vmatprep.subr.mxu0 %v135_v23  ;;  %451 = vmatpush3.msra.mxu1 %v248_v52 }
  0x36   :  { %422 = vmatpush3.msra.mxu0 %v135_v23  ;;  %452 = vmatprep.subr.mxu1 %v247_v53 }
  0x37   :  { %423 = vmatprep.subr.mxu0 %v134_v24  ;;  %453 = vmatpush3.msra.mxu1 %v247_v53 }
  0x38   :  { %424 = vmatpush3.msra.mxu0 %v134_v24  ;;  %454 = vmatprep.subr.mxu1 %v246_v54 }
  0x39   :  { %425 = vmatprep.subr.mxu0 %v133_v25  ;;  %455 = vmatpush3.msra.mxu1 %v246_v54 }
  0x3a   :  { %426 = vmatpush3.msra.mxu0 %v133_v25  ;;  %456 = vmatprep.subr.mxu1 %v245_v55 }
  0x3b   :  { %427 = vmatprep.subr.mxu0 %v132_v26  ;;  %457 = vmatpush3.msra.mxu1 %v245_v55 }
  0x3c   :  { %428 = vmatpush3.msra.mxu0 %v132_v26  ;;  %458 = vmatprep.subr.mxu1 %v244_v56 }
  0x3d   :  { %429 = vmatprep.subr.mxu0 %v131_v27  ;;  %459 = vmatpush3.msra.mxu1 %v244_v56 }
  0x3e   :  { %430 = vmatpush3.msra.mxu0 %v131_v27  ;;  %460 = vmatprep.subr.mxu1 %v243_v57 }
  0x3f   :  { %431 = vmatprep.subr.mxu0 %v130_v28  ;;  %461 = vmatpush3.msra.mxu1 %v243_v57 }
  0x40   :  { %432 = vmatpush3.msra.mxu0 %v130_v28  ;;  %462 = vmatprep.subr.mxu1 %v242_v58 }
  0x41   :  { %433 = vmatprep.subr.mxu0 %v129_v29  ;;  %463 = vmatpush3.msra.mxu1 %v242_v58 }
  0x42   :  { %434 = vmatpush3.msra.mxu0 %v129_v29  ;;  %464 = vmatprep.subr.mxu1 %v241_v59 }
  0x43   :  { %435 = vmatprep.subr.mxu0 %v128_v30  ;;  %465 = vmatpush3.msra.mxu1 %v241_v59 }
  0x44   :  { %436 = vmatpush3.msra.mxu0 %v128_v30  ;;  %466 = vmatprep.subr.mxu1 %v240_v60 }
  0x45   :  { %437 = vmatprep.subr.mxu0 %v127_v31  ;;  %467 = vmatpush3.msra.mxu1 %v240_v60 }
  0x46   :  { %438 = vmatpush3.msra.mxu0 %v127_v31  ;;  %468 = vmatprep.subr.mxu1 %v239_v61 }
  0x47   :  { %469 = vmatpush3.msra.mxu1 %v239_v61 }
  0x48   :  { %470 = vmatprep.subr.mxu1 %v238_v62 }
  0x49   :  { %471 = vmatpush3.msra.mxu1 %v238_v62 }
  0x4a   :  { %472 = vmatprep.subr.mxu1 %v237_v63 }
  0x4b   :  { %473 = vmatpush3.msra.mxu1 %v237_v63 }
  0xaf   :  { %v75_v6 = vpop.xlane.xlu0 %74 }
  0xb0   :  { %v78_v7 = vmul.f32 0.03125, %v75_v6 }
  0xb2   :  { %v85_v10 = vsub.f32 %v72_v0, %v78_v7  ;;  %v369_v0 = vld [vmem:[%s675_s4] ss:$0 sm:$0xff] }
  0xb3   :  { %v77_v11 = vpop.xlane.xlu0 %76 }
  0xb4   :  { %v79_v12 = vmul.f32 0.03125, %v77_v11  ;;  %v643_v13 = vmul.f32 %v366_v9, %v85_v10 }
  0xb6   :  { %v86_v14 = vsub.f32 %v73_v1, %v79_v12  ;;  %v89_v15 = vmul.f32 %v643_v13, %v643_v13 }
  0xb8   :  { %91 = vadd.xlane.f32.xlu1 %v89_v15  ;;  %v647_v16 = vmul.f32 %v366_v9, %v86_v14  ;;  %v370_v15 = vld [vmem:[%s677_s6] ss:$0 sm:$0xff] }
  0xba   :  { %v90_v17 = vmul.f32 %v647_v16, %v647_v16 }
  0xbc   :  { %93 = vadd.xlane.f32.xlu1 %v90_v17 }
 0x141   :  { %v92_v35 = vpop.xlane.xlu1 %91 }
 0x142   :  { %v95_v36 = vmul.f32 0.03125, %v92_v35 }
 0x144   :  { %v97_v37 = vadd.f32 1e-05, %v95_v36 }
 0x145   :  { %v94_v38 = vpop.xlane.xlu1 %93 }
 0x146   :  { %484 = vrsqrt.f32 %v97_v37  ;;  %v96_v39 = vmul.f32 0.03125, %v94_v38 }
 0x148   :  { %v98_v40 = vadd.f32 1e-05, %v96_v39 }
 0x14a   :  { %486 = vrsqrt.f32 %v98_v40 }
 0x153   :  { %v485_v41 = vpop.eup %484 }
 0x154   :  { %v101_v43 = vmul.f32 %v485_v41, %v643_v13 }
 0x156   :  { %v110_v45 = vmul.f32 %v367_v42, %v101_v43 }
 0x157   :  { %v487_v46 = vpop.eup %486 }
 0x158   :  { %v102_v47 = vmul.f32 %v487_v46, %v647_v16  ;;  %v119_v48 = vadd.f32 %v368_v44, %v110_v45 }
 0x15a   :  { %v111_v49 = vmul.f32 %v367_v42, %v102_v47  ;;  %439 = vmatprep.mubr.f32.mxu0 %v119_v48 }
 0x15c   :  { %v120_v50 = vadd.f32 %v368_v44, %v111_v49 }
 0x15e   :  { %440 = vmatmul.mubr.f32.vlgmr.msra.gmra.mxu0 %v120_v50 }
 0x21e   :  { %v441_v1 = vpop.f32.mrf.mxu0 }
 0x21f   :  { %v222_v2 = vadd.f32 %v441_v1, %v369_v0 }
 0x220   :  { %v216_v3 = vpop.f32.mrf.mxu0 }
 0x221   :  { %v228_v4 = vmul.f32 0.70710677, %v222_v2  ;;  %v217_v5 = vadd.f32 %v369_v0, %v216_v3  ;;  %v226_v12 = vmul.f32 0.5, %v222_v2 }
 0x223   :  { %488 = verf.f32 %v228_v4  ;;  %v227_v6 = vmul.f32 0.70710677, %v217_v5  ;;  %v225_v10 = vmul.f32 0.5, %v217_v5 }
 0x225   :  { %490 = verf.f32 %v227_v6 }
 0x230   :  { %v489_v7 = vpop.eup %488 }
 0x231   :  { %v232_v9 = vadd.f32 1.0, %v489_v7 }
 0x232   :  { %v491_v8 = vpop.eup %490 }
 0x233   :  { %v231_v11 = vadd.f32 1.0, %v491_v8  ;;  %v234_v14 = vmul.f32 %v232_v9, %v226_v12 }
 0x235   :  { %v233_v13 = vmul.f32 %v231_v11, %v225_v10 }
 0x237   :  { %474 = vmatprep.mubr.f32.mxu1 %v233_v13 }
 0x238   :  { %475 = vmatmul.mubr.f32.vlgmr.msra.gmra.mxu1 %v234_v14 }
 0x2f8   :  { %v476_v16 = vpop.f32.mrf.mxu1 }
 0x2f9   :  { %v345_v17 = vadd.f32 %v476_v16, %v370_v15 }
 0x2fa   :  { %v319_v18 = vpop.f32.mrf.mxu1 }
 0x2fb   :  { %347 = vst [vmem:[#allocation10 + $0x8] sm:$0xff] %v345_v17  ;;  %v344_v19 = vadd.f32 %v370_v15, %v319_v18 }
 0x2fd   :  { %346 = vst [vmem:[#allocation10] sm:$0xff] %v344_v19 }
 0x2fe   :  { %563 = shalt.err (!%p560_p5)
}
 0x2ff   :  { %359 = dma.vmem_to_hbm [thread:$0]  %s354_s21, 256, %s678_s7, [#allocation6], %s580_s29, %s580_s29, %s581_s30  }
 0x300   :  { %576 = dma.done.wait [#allocation6], 256  }
 0x301   :  { %577 = vsyncadd [#allocation6], 4294967040 }
 0x302   :  { %363 = vsyncpa [#allocation5], 1 }
 0x303   :  { %364 = vsyncpa [#allocation8], 1 }
 0x304   :  { %365 = vsyncpa [#allocation6], 1 }

</bundles_post_ra>
